<compile_context>
chip_gen: v7x
topology: tpu7x:2x2x1
jax: 0.10.0
libtpu: 0.0.40
codegen_flags: <defaults>
</compile_context>

<pallas_src>
import jax
import jax.numpy as jnp
from jax.experimental import pallas as pl
from jax.experimental.pallas import tpu as pltpu

# ---------------------------------------------------------------------------
# Problem sizes
# ---------------------------------------------------------------------------
BATCH = 2
WORD_LEN = 8
ALPHABET = 27                 # 26 letters + blank "_" slot in the word one-hot
NUM_ACTIONS = 26              # num_outputs == size of action_mask
GUESSED_DIM = 26
FEATURES_DIM = 128
HIDDEN = 128
D_IN = WORD_LEN * ALPHABET + GUESSED_DIM   # 242 (flattened obs)

# Padded / tiled kernel sizes
D_IN_PAD = 256                # contracting dim -> exact 2x(128) / single 256 MXU pass
A_PAD = 128                   # action dim -> lane-dense (unmasked) vector stores
B_TILE = 256                  # batch rows per grid step (tiny VMEM footprint)


# ---------------------------------------------------------------------------
# Fused kernel: feature-extractor MLP + policy head + action masking
# ---------------------------------------------------------------------------
def hangman_policy_kernel(
    x_ref,        # [B_TILE, D_IN_PAD]   bf16 flattened observation (zero-padded)
    mask_ref,     # [B_TILE, A_PAD]      f32 action_mask (0/1, zero-padded)
    w1_ref,       # [D_IN_PAD, HIDDEN]   bf16
    b1_ref,       # [1, HIDDEN]          f32
    w2_ref,       # [HIDDEN, FEATURES_DIM] bf16
    b2_ref,       # [1, FEATURES_DIM]    f32
    w3_ref,       # [FEATURES_DIM, A_PAD] bf16
    b3_ref,       # [1, A_PAD]           f32
    out_ref,      # [B_TILE, A_PAD]      f32 masked logits
):
    # HangmanFeaturesExtractor: Linear -> ReLU -> Linear -> ReLU
    # bf16 MXU inputs, f32 accumulation; all elementwise work stays f32.
    h1 = jnp.dot(x_ref[...], w1_ref[...],
                 preferred_element_type=jnp.float32) + b1_ref[...]
    h1 = jnp.maximum(h1, 0.0)

    feats = jnp.dot(h1.astype(jnp.bfloat16), w2_ref[...],
                    preferred_element_type=jnp.float32) + b2_ref[...]
    feats = jnp.maximum(feats, 0.0)

    # policy_net: Linear(128, num_outputs) (padded to 128 lanes)
    logits = jnp.dot(feats.astype(jnp.bfloat16), w3_ref[...],
                     preferred_element_type=jnp.float32) + b3_ref[...]

    # masked_logits = logits + (action_mask == 0) * -1e9  -> single vselect
    out_ref[...] = logits + jnp.where(mask_ref[...] == 0.0, -1e9, 0.0)


def _pad2d(x, rows, cols, dtype):
    """Zero-pad a 2-D array up to (rows, cols) and cast."""
    out = jnp.zeros((rows, cols), dtype)
    return out.at[: x.shape[0], : x.shape[1]].set(x.astype(dtype))


def hangman_policy_forward(x_flat, action_mask, params):
    """x_flat: [B, D_IN] f32, action_mask: [B, A] f32 -> masked logits [B, A] f32."""
    w1, b1, w2, b2, w3, b3 = params
    B = x_flat.shape[0]
    n_tiles = pl.cdiv(B, B_TILE)
    B_pad = n_tiles * B_TILE

    # Pad + cast matmul operands to bf16 at the call boundary (halves weight DMA,
    # bf16 MXU path). Biases stay f32 (elementwise work is f32 in-kernel).
    x_p = _pad2d(x_flat, B_pad, D_IN_PAD, jnp.bfloat16)
    m_p = _pad2d(action_mask, B_pad, A_PAD, jnp.float32)
    w1_p = _pad2d(w1, D_IN_PAD, HIDDEN, jnp.bfloat16)
    w2_p = w2.astype(jnp.bfloat16)
    w3_p = _pad2d(w3, FEATURES_DIM, A_PAD, jnp.bfloat16)
    b1_p = b1.astype(jnp.float32)
    b2_p = b2.astype(jnp.float32)
    b3_p = _pad2d(b3, 1, A_PAD, jnp.float32)

    flops = 2 * B_pad * (D_IN_PAD * HIDDEN + HIDDEN * FEATURES_DIM
                         + FEATURES_DIM * A_PAD)
    bytes_accessed = (
        x_p.size * 2 + m_p.size * 4                       # activations in
        + w1_p.size * 2 + w2_p.size * 2 + w3_p.size * 2   # bf16 weights
        + b1_p.size * 4 + b2_p.size * 4 + b3_p.size * 4   # f32 biases
        + B_pad * A_PAD * 4                               # f32 output
    )

    def _weight_spec(shape):
        # Weights/biases: same block every grid step -> resident in VMEM.
        return pl.BlockSpec(shape, lambda i: (0, 0))

    out_pad = pl.pallas_call(
        hangman_policy_kernel,
        out_shape=jax.ShapeDtypeStruct((B_pad, A_PAD), jnp.float32),
        grid=(n_tiles,),
        in_specs=[
            pl.BlockSpec((B_TILE, D_IN_PAD), lambda i: (i, 0)),   # x
            pl.BlockSpec((B_TILE, A_PAD), lambda i: (i, 0)),      # action_mask
            _weight_spec((D_IN_PAD, HIDDEN)),                     # w1
            _weight_spec((1, HIDDEN)),                            # b1
            _weight_spec((HIDDEN, FEATURES_DIM)),                 # w2
            _weight_spec((1, FEATURES_DIM)),                      # b2
            _weight_spec((FEATURES_DIM, A_PAD)),                  # w3
            _weight_spec((1, A_PAD)),                             # b3
        ],
        out_specs=pl.BlockSpec((B_TILE, A_PAD), lambda i: (i, 0)),
        compiler_params=pltpu.CompilerParams(
            dimension_semantics=("parallel",),          # shard batch grid on v7x
            vmem_limit_bytes=32 * 1024 * 1024,          # safe on v7x 64 MiB VMEM
        ),
        cost_estimate=pl.CostEstimate(
            flops=flops, transcendentals=0, bytes_accessed=bytes_accessed),
    )(x_p, m_p, w1_p, b1_p, w2_p, b2_p, w3_p, b3_p)

    # Strip batch / action padding.
    return out_pad[:B, :NUM_ACTIONS]


# ---------------------------------------------------------------------------
# Deterministic parameter init (nn.Linear-style uniform(-1/sqrt(fan_in), ...))
# ---------------------------------------------------------------------------
def init_params(key):
    def linear(k, fan_in, fan_out):
        kw, kb = jax.random.split(k)
        bound = 1.0 / jnp.sqrt(jnp.asarray(fan_in, jnp.float32))
        w = jax.random.uniform(kw, (fan_in, fan_out), jnp.float32, -bound, bound)
        b = jax.random.uniform(kb, (1, fan_out), jnp.float32, -bound, bound)
        return w, b

    k1, k2, k3 = jax.random.split(key, 3)
    w1, b1 = linear(k1, D_IN, HIDDEN)                 # extractor layer 1
    w2, b2 = linear(k2, HIDDEN, FEATURES_DIM)         # extractor layer 2 -> 128 feats
    w3, b3 = linear(k3, FEATURES_DIM, NUM_ACTIONS)    # policy_net
    return (w1, b1, w2, b2, w3, b3)


# ---------------------------------------------------------------------------
# Glue: build the dict observation and flatten it (plain JAX, not hot path)
# ---------------------------------------------------------------------------
def flatten_obs(word_onehot, guessed):
    return jnp.concatenate(
        [word_onehot.reshape(word_onehot.shape[0], -1), guessed], axis=-1
    ).astype(jnp.float32)


def reference_forward(x_flat, action_mask, params):
    """Pure-JAX reference with the same bf16-operand / f32-accumulate math."""
    w1, b1, w2, b2, w3, b3 = params
    xb = x_flat.astype(jnp.bfloat16)
    h1 = jnp.maximum(
        jnp.dot(xb, w1.astype(jnp.bfloat16),
                preferred_element_type=jnp.float32) + b1, 0.0)
    feats = jnp.maximum(
        jnp.dot(h1.astype(jnp.bfloat16), w2.astype(jnp.bfloat16),
                preferred_element_type=jnp.float32) + b2, 0.0)
    logits = jnp.dot(feats.astype(jnp.bfloat16), w3.astype(jnp.bfloat16),
                     preferred_element_type=jnp.float32) + b3
    return logits + (action_mask == 0.0).astype(jnp.float32) * (-1e9)


if __name__ == "__main__":
    key = jax.random.PRNGKey(0)
    k_params, k_word, k_guess, k_mask = jax.random.split(key, 4)

    params = init_params(k_params)

    # Synthetic Hangman observation dict.
    word_ids = jax.random.randint(k_word, (BATCH, WORD_LEN), 0, ALPHABET)
    word_onehot = jax.nn.one_hot(word_ids, ALPHABET, dtype=jnp.float32)   # [B, L, 27]
    guessed = (jax.random.uniform(k_guess, (BATCH, GUESSED_DIM)) > 0.5).astype(jnp.float32)
    action_mask = (jax.random.uniform(k_mask, (BATCH, NUM_ACTIONS)) > 0.3).astype(jnp.float32)

    x_flat = flatten_obs(word_onehot, guessed)                            # [B, D_IN]

    masked_logits = hangman_policy_forward(x_flat, action_mask, params)
    masked_logits = jax.block_until_ready(masked_logits)

    # Sanity check against a pure-JAX reference of the same math.
    ref = reference_forward(x_flat, action_mask, params)
    assert masked_logits.shape == (BATCH, NUM_ACTIONS)
    assert jnp.allclose(masked_logits, ref, atol=1e-2, rtol=1e-2)

    print("KERNEL_OK")
</pallas_src>

<mosaic_0001>
module attributes {stable_mosaic.version = 11 : i64} {
  func.func @hangman_policy_kernel(%arg0: i32, %arg1: memref<256x256xbf16, #tpu.memory_space<vmem>>, %arg2: memref<256x128xf32, #tpu.memory_space<vmem>>, %arg3: memref<256x128xbf16, #tpu.memory_space<vmem>>, %arg4: memref<1x128xf32, #tpu.memory_space<vmem>>, %arg5: memref<128x128xbf16, #tpu.memory_space<vmem>>, %arg6: memref<1x128xf32, #tpu.memory_space<vmem>>, %arg7: memref<128x128xbf16, #tpu.memory_space<vmem>>, %arg8: memref<1x128xf32, #tpu.memory_space<vmem>>, %arg9: memref<256x128xf32, #tpu.memory_space<vmem>>) attributes {dimension_semantics = [#tpu.dimension_semantics<parallel>], iteration_bounds = array<i64: 1>, scalar_prefetch = 0 : i64, scratch_operands = 0 : i64, tpu.core_type = #tpu.core_type<tc>, window_params = [{transform_indices = @transform_0, window_bounds = array<i64: 256, 256>}, {transform_indices = @transform_1, window_bounds = array<i64: 256, 128>}, {pipeline_mode = #tpu.pipeline_mode<synchronous>, transform_indices = @transform_2, window_bounds = array<i64: 256, 128>}, {pipeline_mode = #tpu.pipeline_mode<synchronous>, transform_indices = @transform_3, window_bounds = array<i64: 1, 128>}, {pipeline_mode = #tpu.pipeline_mode<synchronous>, transform_indices = @transform_4, window_bounds = array<i64: 128, 128>}, {pipeline_mode = #tpu.pipeline_mode<synchronous>, transform_indices = @transform_5, window_bounds = array<i64: 1, 128>}, {pipeline_mode = #tpu.pipeline_mode<synchronous>, transform_indices = @transform_6, window_bounds = array<i64: 128, 128>}, {pipeline_mode = #tpu.pipeline_mode<synchronous>, transform_indices = @transform_7, window_bounds = array<i64: 1, 128>}, {transform_indices = @transform_8, window_bounds = array<i64: 256, 128>}]} {
    %c0 = arith.constant 0 : index
    %c0_0 = arith.constant 0 : index
    %0 = vector.load %arg1[%c0, %c0_0] : memref<256x256xbf16, #tpu.memory_space<vmem>>, vector<256x256xbf16>
    %c0_1 = arith.constant 0 : index
    %c0_2 = arith.constant 0 : index
    %1 = vector.load %arg3[%c0_1, %c0_2] : memref<256x128xbf16, #tpu.memory_space<vmem>>, vector<256x128xbf16>
    %cst = arith.constant dense<0.000000e+00> : vector<256x128xf32>
    %2 = tpu.matmul %0, %1, %cst {dimension_numbers = #tpu.dot_dimension_numbers<[1], [0], [0], [1], [0, 0, 1, 1], [], []>} : vector<256x256xbf16>, vector<256x128xbf16>, vector<256x128xf32> -> vector<256x128xf32>
    %c0_3 = arith.constant 0 : index
    %c0_4 = arith.constant 0 : index
    %3 = vector.load %arg4[%c0_3, %c0_4] : memref<1x128xf32, #tpu.memory_space<vmem>>, vector<1x128xf32>
    %4 = vector.broadcast %3 : vector<1x128xf32> to vector<256x128xf32>
    %5 = arith.addf %2, %4 : vector<256x128xf32>
    %cst_5 = arith.constant 0.000000e+00 : f32
    %6 = vector.broadcast %cst_5 : f32 to vector<256x128xf32>
    %7 = arith.maximumf %5, %6 : vector<256x128xf32>
    %8 = arith.truncf %7 : vector<256x128xf32> to vector<256x128xbf16>
    %c0_6 = arith.constant 0 : index
    %c0_7 = arith.constant 0 : index
    %9 = vector.load %arg5[%c0_6, %c0_7] : memref<128x128xbf16, #tpu.memory_space<vmem>>, vector<128x128xbf16>
    %cst_8 = arith.constant dense<0.000000e+00> : vector<256x128xf32>
    %10 = tpu.matmul %8, %9, %cst_8 {dimension_numbers = #tpu.dot_dimension_numbers<[1], [0], [0], [1], [0, 0, 1, 1], [], []>} : vector<256x128xbf16>, vector<128x128xbf16>, vector<256x128xf32> -> vector<256x128xf32>
    %c0_9 = arith.constant 0 : index
    %c0_10 = arith.constant 0 : index
    %11 = vector.load %arg6[%c0_9, %c0_10] : memref<1x128xf32, #tpu.memory_space<vmem>>, vector<1x128xf32>
    %12 = vector.broadcast %11 : vector<1x128xf32> to vector<256x128xf32>
    %13 = arith.addf %10, %12 : vector<256x128xf32>
    %cst_11 = arith.constant 0.000000e+00 : f32
    %14 = vector.broadcast %cst_11 : f32 to vector<256x128xf32>
    %15 = arith.maximumf %13, %14 : vector<256x128xf32>
    %16 = arith.truncf %15 : vector<256x128xf32> to vector<256x128xbf16>
    %c0_12 = arith.constant 0 : index
    %c0_13 = arith.constant 0 : index
    %17 = vector.load %arg7[%c0_12, %c0_13] : memref<128x128xbf16, #tpu.memory_space<vmem>>, vector<128x128xbf16>
    %cst_14 = arith.constant dense<0.000000e+00> : vector<256x128xf32>
    %18 = tpu.matmul %16, %17, %cst_14 {dimension_numbers = #tpu.dot_dimension_numbers<[1], [0], [0], [1], [0, 0, 1, 1], [], []>} : vector<256x128xbf16>, vector<128x128xbf16>, vector<256x128xf32> -> vector<256x128xf32>
    %c0_15 = arith.constant 0 : index
    %c0_16 = arith.constant 0 : index
    %19 = vector.load %arg8[%c0_15, %c0_16] : memref<1x128xf32, #tpu.memory_space<vmem>>, vector<1x128xf32>
    %20 = vector.broadcast %19 : vector<1x128xf32> to vector<256x128xf32>
    %21 = arith.addf %18, %20 : vector<256x128xf32>
    %c0_17 = arith.constant 0 : index
    %c0_18 = arith.constant 0 : index
    %22 = vector.load %arg2[%c0_17, %c0_18] : memref<256x128xf32, #tpu.memory_space<vmem>>, vector<256x128xf32>
    %cst_19 = arith.constant 0.000000e+00 : f32
    %23 = vector.broadcast %cst_19 : f32 to vector<256x128xf32>
    %24 = arith.cmpf oeq, %22, %23 : vector<256x128xf32>
    %cst_20 = arith.constant -1.000000e+09 : f32
    %cst_21 = arith.constant 0.000000e+00 : f32
    %25 = vector.broadcast %cst_20 : f32 to vector<256x128xf32>
    %26 = vector.broadcast %cst_21 : f32 to vector<256x128xf32>
    %27 = arith.select %24, %25, %26 : vector<256x128xi1>, vector<256x128xf32>
    %28 = arith.addf %21, %27 : vector<256x128xf32>
    %c0_22 = arith.constant 0 : index
    %c0_23 = arith.constant 0 : index
    %29 = vector.load %arg9[%c0_22, %c0_23] : memref<256x128xf32, #tpu.memory_space<vmem>>, vector<256x128xf32>
    tpu.vector_store %arg9[%c0_22, %c0_23], %28 {strides = array<i32>} : memref<256x128xf32, #tpu.memory_space<vmem>>, vector<256x128xf32>,
    return
  }
  func.func @transform_0(%arg0: i32) -> (i32, i32) {
    %c0_i32 = arith.constant 0 : i32
    %c0_i32_0 = arith.constant 0 : i32
    return %arg0, %c0_i32 : i32, i32
  }
  func.func @transform_1(%arg0: i32) -> (i32, i32) {
    %c0_i32 = arith.constant 0 : i32
    %c0_i32_0 = arith.constant 0 : i32
    return %arg0, %c0_i32 : i32, i32
  }
  func.func @transform_2(%arg0: i32) -> (i32, i32) {
    %c0_i32 = arith.constant 0 : i32
    %c0_i32_0 = arith.constant 0 : i32
    %c0_i32_1 = arith.constant 0 : i32
    return %c0_i32, %c0_i32_0 : i32, i32
  }
  func.func @transform_3(%arg0: i32) -> (i32, i32) {
    %c0_i32 = arith.constant 0 : i32
    %c0_i32_0 = arith.constant 0 : i32
    %c0_i32_1 = arith.constant 0 : i32
    return %c0_i32, %c0_i32_0 : i32, i32
  }
  func.func @transform_4(%arg0: i32) -> (i32, i32) {
    %c0_i32 = arith.constant 0 : i32
    %c0_i32_0 = arith.constant 0 : i32
    %c0_i32_1 = arith.constant 0 : i32
    return %c0_i32, %c0_i32_0 : i32, i32
  }
  func.func @transform_5(%arg0: i32) -> (i32, i32) {
    %c0_i32 = arith.constant 0 : i32
    %c0_i32_0 = arith.constant 0 : i32
    %c0_i32_1 = arith.constant 0 : i32
    return %c0_i32, %c0_i32_0 : i32, i32
  }
  func.func @transform_6(%arg0: i32) -> (i32, i32) {
    %c0_i32 = arith.constant 0 : i32
    %c0_i32_0 = arith.constant 0 : i32
    %c0_i32_1 = arith.constant 0 : i32
    return %c0_i32, %c0_i32_0 : i32, i32
  }
  func.func @transform_7(%arg0: i32) -> (i32, i32) {
    %c0_i32 = arith.constant 0 : i32
    %c0_i32_0 = arith.constant 0 : i32
    %c0_i32_1 = arith.constant 0 : i32
    return %c0_i32, %c0_i32_0 : i32, i32
  }
  func.func @transform_8(%arg0: i32) -> (i32, i32) {
    %c0_i32 = arith.constant 0 : i32
    %c0_i32_0 = arith.constant 0 : i32
    return %arg0, %c0_i32 : i32, i32
  }
}

</mosaic_0001>

<bundles_post_ra>
// kernel: tpu_custom_call.1
= control target key start
LH: loop header
LB: loop body
LE: loop exit
PB: predicated region body
PF: predicated region fallthrough
CT: control target
= control target key end

     0   :  { %13 = vsyncpa [#allocation3], 0  ;;  %s2169_s0 = inlined_call_operand.hbm [shape: bf16[256,256], index: 0, kind: input, shape index: {}]   ;;  %s2170_s1 = inlined_call_operand.hbm [shape: f32[256,128], index: 1, kind: input, shape index: {}]   ;;  %s2171_s2 = inlined_call_operand.hbm [shape: bf16[256,128], index: 2, kind: input, shape index: {}]   ;;  %s2172_s3 = inlined_call_operand.vmem [shape: f32[1,128], index: 3, kind: input, shape index: {}]   ;;  %s2173_s4 = inlined_call_operand.hbm [shape: bf16[128,128], index: 4, kind: input, shape index: {}]   ;;  %s2174_s5 = inlined_call_operand.vmem [shape: f32[1,128], index: 5, kind: input, shape index: {}]   ;;  %s2175_s6 = inlined_call_operand.hbm [shape: bf16[128,128], index: 6, kind: input, shape index: {}]   ;;  %s2176_s7 = inlined_call_operand.vmem [shape: f32[1,128], index: 7, kind: input, shape index: {}]   ;;  %s2177_s8 = inlined_call_operand.hbm [shape: f32[256,128], index: 8, kind: output, shape index: {}]  }
   0x1   :  { %14 = vsyncpa [#allocation6], 0 }
   0x2   :  { %15 = vsyncpa [#allocation9], 0 }
   0x3   :  { %16 = vsyncpa [#allocation4], 0  ;;  %s1880_s27 = smov [#allocation5]   ;;  %s1740_s9 = scalar_lea.hbm %s2170_s1, 4096 }
   0x4   :  { %s34_s28 = sshll.u32 %s1880_s27, 4  ;;  %p1741_p0 = scmp.ne.s32.totalorder %s2170_s1, %s1740_s9  ;;  %s35_s28 = int_to_ptr.vmem [resolvable:$true] %s34_s28 }
   0x5   :  { %p1744_p1 = scmp.lt.u32.totalorder %s1740_s9, %s2170_s1 }
   0x7   :  { %p1746_p2 = pnand %p1744_p1, %p1741_p0 }
   0x9   :  { %1749 = shalt.err (!%p1746_p2)
}
   0xa   :  { %s1750_s14 = scalar_lea.vmem %s35_s28, 4096  ;;  %p1755_p4 = scmp.lt.s32.totalorder %s35_s28, %s35_s28 }
   0xb   :  { %p1751_p3 = scmp.ne.s32.totalorder %s35_s28, %s1750_s14  ;;  %p1756_p5 = scmp.lt.s32.totalorder %s1750_s14, %s1750_s14 }
   0xd   :  { %p1757_p6 = por %p1756_p5, %p1755_p4 }
   0xf   :  { %p1758_p7 = pnand %p1757_p6, %p1751_p3 }
  0x11   :  { %1761 = shalt.err (!%p1758_p7)
}
  0x12   :  { %s1881_s15 = smov 128   ;;  %s1882_s16 = smov 8  }
  0x13   :  { %40 = dma.hbm_to_vmem [thread:$0]  %s2170_s1, 4096, %s35_s28, [#allocation6], %s1881_s15, %s1881_s15, %s1882_s16  }
  0x14   :  { %s1883_s19 = smov [#allocation8]   ;;  %s1884_s21 = smov [#allocation2]  }
  0x15   :  { %s60_s20 = sshll.u32 %s1883_s19, 4  ;;  %s22_s22 = sshll.u32 %s1884_s21, 4  ;;  %s61_s20 = int_to_ptr.vmem [resolvable:$true] %s60_s20  ;;  %s23_s22 = int_to_ptr.vmem [resolvable:$true] %s22_s22 }
  0x16   :  { %s1762_s25 = scalar_lea.hbm %s2173_s4, 1024 }
  0x17   :  { %p1763_p8 = scmp.ne.s32.totalorder %s2173_s4, %s1762_s25  ;;  %p1766_p9 = scmp.lt.u32.totalorder %s1762_s25, %s2173_s4 }
  0x19   :  { %p1768_p10 = pnand %p1766_p9, %p1763_p8 }
  0x1b   :  { %1771 = shalt.err (!%p1768_p10)
}
  0x1c   :  { %s1772_s1 = scalar_lea.vmem %s61_s20, 1024  ;;  %p1777_p12 = scmp.lt.s32.totalorder %s61_s20, %s61_s20 }
  0x1d   :  { %p1773_p11 = scmp.ne.s32.totalorder %s61_s20, %s1772_s1  ;;  %p1778_p13 = scmp.lt.s32.totalorder %s1772_s1, %s1772_s1 }
  0x1f   :  { %p1779_p0 = por %p1778_p13, %p1777_p12 }
  0x21   :  { %p1780_p1 = pnand %p1779_p0, %p1773_p11 }
  0x23   :  { %1783 = shalt.err (!%p1780_p1)
}
  0x24   :  { %s1885_s28 = smov 64   ;;  %s1886_s9 = smov 4  }
  0x25   :  { %66 = dma.hbm_to_vmem [thread:$0]  %s2173_s4, 1024, %s61_s20, [#allocation9], %s1885_s28, %s1885_s28, %s1886_s9  }
  0x26   :  { %s1784_s14 = scalar_lea.hbm %s2169_s0, 4096 }
  0x27   :  { %p1785_p2 = scmp.ne.s32.totalorder %s2169_s0, %s1784_s14  ;;  %p1788_p3 = scmp.lt.u32.totalorder %s1784_s14, %s2169_s0 }
  0x29   :  { %p1790_p4 = pnand %p1788_p3, %p1785_p2 }
  0x2b   :  { %1793 = shalt.err (!%p1790_p4)
}
  0x2c   :  { %s1794_s23 = scalar_lea.vmem %s23_s22, 4096  ;;  %p1799_p6 = scmp.lt.s32.totalorder %s23_s22, %s23_s22 }
  0x2d   :  { %p1795_p5 = scmp.ne.s32.totalorder %s23_s22, %s1794_s23  ;;  %p1800_p7 = scmp.lt.s32.totalorder %s1794_s23, %s1794_s23 }
  0x2f   :  { %p1801_p8 = por %p1800_p7, %p1799_p6 }
  0x31   :  { %p1802_p9 = pnand %p1801_p8, %p1795_p5 }
  0x33   :  { %1805 = shalt.err (!%p1802_p9)
}
  0x34   :  { %28 = dma.hbm_to_vmem [thread:$0]  %s2169_s0, 4096, %s23_s22, [#allocation3], %s1881_s15, %s1881_s15, %s1882_s16  }
  0x35   :  { %s1887_s24 = smov [#allocation7]   ;;  %s1888_s26 = smov [#allocation10]  }
  0x36   :  { %s46_s25 = sshll.u32 %s1887_s24, 4  ;;  %s74_s27 = sshll.u32 %s1888_s26, 4  ;;  %s47_s25 = int_to_ptr.vmem [resolvable:$true] %s46_s25  ;;  %s75_s27 = int_to_ptr.vmem [resolvable:$true] %s74_s27 }
  0x37   :  { %s1806_s1 = scalar_lea.hbm %s2171_s2, 2048 }
  0x38   :  { %p1807_p10 = scmp.ne.s32.totalorder %s2171_s2, %s1806_s1  ;;  %p1810_p11 = scmp.lt.u32.totalorder %s1806_s1, %s2171_s2 }
  0x3a   :  { %p1812_p12 = pnand %p1810_p11, %p1807_p10 }
  0x3c   :  { %1815 = shalt.err (!%p1812_p12)
}
  0x3d   :  { %s1816_s0 = scalar_lea.vmem %s47_s25, 2048  ;;  %p1821_p0 = scmp.lt.s32.totalorder %s47_s25, %s47_s25 }
  0x3e   :  { %p1817_p13 = scmp.ne.s32.totalorder %s47_s25, %s1816_s0  ;;  %p1822_p1 = scmp.lt.s32.totalorder %s1816_s0, %s1816_s0 }
  0x40   :  { %p1823_p2 = por %p1822_p1, %p1821_p0 }
  0x42   :  { %p1824_p3 = pnand %p1823_p2, %p1817_p13 }
  0x44   :  { %1827 = shalt.err (!%p1824_p3)
}
  0x45   :  { %52 = dma.hbm_to_vmem [thread:$0]  %s2171_s2, 2048, %s47_s25, [#allocation6], %s1885_s28, %s1885_s28, %s1886_s9  }
  0x46   :  { %s1828_s19 = scalar_lea.hbm %s2175_s6, 1024 }
  0x47   :  { %p1829_p4 = scmp.ne.s32.totalorder %s2175_s6, %s1828_s19  ;;  %p1832_p5 = scmp.lt.u32.totalorder %s1828_s19, %s2175_s6 }
  0x49   :  { %p1834_p6 = pnand %p1832_p5, %p1829_p4 }
  0x4b   :  { %1837 = shalt.err (!%p1834_p6)
}
  0x4c   :  { %s1838_s24 = scalar_lea.vmem %s75_s27, 1024  ;;  %p1843_p8 = scmp.lt.s32.totalorder %s75_s27, %s75_s27 }
  0x4d   :  { %p1839_p7 = scmp.ne.s32.totalorder %s75_s27, %s1838_s24  ;;  %p1844_p9 = scmp.lt.s32.totalorder %s1838_s24, %s1838_s24 }
  0x4f   :  { %p1845_p10 = por %p1844_p9, %p1843_p8 }
  0x51   :  { %p1846_p11 = pnand %p1845_p10, %p1839_p7 }
  0x53   :  { %1849 = shalt.err (!%p1846_p11)
}
  0x54   :  { %80 = dma.hbm_to_vmem [thread:$0]  %s2175_s6, 1024, %s75_s27, [#allocation9], %s1885_s28, %s1885_s28, %s1886_s9  }
  0x55   :  { %1872 = dma.done.wait [#allocation3], 4096  }
  0x56   :  { %1873 = vsyncadd [#allocation3], 4294963200 }
  0x57   :  { %1874 = dma.done.wait [#allocation6], 6144  }
  0x58   :  { %1875 = vsyncadd [#allocation6], 4294961152 }
  0x59   :  { %1876 = dma.done.wait [#allocation9], 2048  }
  0x5a   :  { %1877 = vsyncadd [#allocation9], 4294965248  ;;  %v1660_v0 = vld [vmem:[#allocation7 + $0x40] sm:$0xff]   ;;  %v1662_v2 = vld [vmem:[#allocation7 + $0x48] sm:$0xff]  }
  0x5b   :  { %v1661_v1 = vld [vmem:[#allocation7] sm:$0xff]   ;;  %1393 = vmatprep.subr.bf16.mxu0 %v1660_v0  ;;  %v1663_v3 = vld [vmem:[#allocation7 + $0x8] sm:$0xff]   ;;  %v1664_v4 = vld [vmem:[#allocation7 + $0x50] sm:$0xff]  }
  0x5c   :  { %1394 = vmatpush3.bf16.msra.mxu0 %v1661_v1  ;;  %v1665_v5 = vld [vmem:[#allocation7 + $0x10] sm:$0xff]   ;;  %v1666_v6 = vld [vmem:[#allocation7 + $0x58] sm:$0xff]   ;;  %v1668_v8 = vld [vmem:[#allocation7 + $0x60] sm:$0xff]  }
  0x5d   :  { %1395 = vmatprep.subr.bf16.mxu0 %v1662_v2  ;;  %v1667_v7 = vld [vmem:[#allocation7 + $0x18] sm:$0xff]   ;;  %v1669_v9 = vld [vmem:[#allocation7 + $0x20] sm:$0xff]   ;;  %v1670_v10 = vld [vmem:[#allocation7 + $0x68] sm:$0xff]  }
  0x5e   :  { %v1678_v11 = vld [vmem:[#allocation2 + $0x4] ss:$8 sps:$4 sm:$0xff]   ;;  %v1672_v13 = vld [vmem:[#allocation7 + $0x70] sm:$0xff]   ;;  %v1674_v15 = vld [vmem:[#allocation7 + $0x78] sm:$0xff]  }
  0x5f   :  { %v1671_v12 = vld [vmem:[#allocation7 + $0x28] sm:$0xff]   ;;  %458 = vmatprep.mubr.bf16.mxu0 %v1678_v11  ;;  %v1673_v14 = vld [vmem:[#allocation7 + $0x30] sm:$0xff]   ;;  %v1675_v16 = vld [vmem:[#allocation7 + $0x38] sm:$0xff]  }
  0x60   :  { %1396 = vmatpush3.bf16.msra.mxu0 %v1663_v3  ;;  %v1676_v17 = vld [vmem:[#allocation2] ss:$8 sps:$4 sm:$0xff]   ;;  %v1679_v18 = vld [vmem:[#allocation2 + $0x14] ss:$8 sps:$4 sm:$0xff]   ;;  %v1681_v19 = vld [vmem:[#allocation2 + $0x10] ss:$8 sps:$4 sm:$0xff]  }
  0x61   :  { %1397 = vmatprep.subr.bf16.mxu0 %v1664_v4  ;;  %v1682_v20 = vld [vmem:[#allocation2 + $0x24] ss:$8 sps:$4 sm:$0xff]   ;;  %v1726_v23 = vld [vmem:[#allocation8 + $0x10] sm:$0xff]   ;;  %v1684_v24 = vld [vmem:[#allocation2 + $0x20] ss:$8 sps:$4 sm:$0xff]  }
  0x62   :  { %v1724_v21 = vld [vmem:[#allocation8] sm:$0xff]   ;;  %v1725_v22 = vld [vmem:[#allocation8 + $0x8] sm:$0xff]   ;;  %v1685_v25 = vld [vmem:[#allocation2 + $0x34] ss:$8 sps:$4 sm:$0xff]  }
  0x63   :  { %1553 = vmatprep.subr.bf16.mxu1 %v1724_v21  ;;  %v1687_v26 = vld [vmem:[#allocation2 + $0x30] ss:$8 sps:$4 sm:$0xff]   ;;  %v1688_v27 = vld [vmem:[#allocation2 + $0x44] ss:$8 sps:$4 sm:$0xff]   ;;  %v1690_v28 = vld [vmem:[#allocation2 + $0x40] ss:$8 sps:$4 sm:$0xff]  }
  0x64   :  { %1398 = vmatpush3.bf16.msra.mxu0 %v1665_v5  ;;  %1554 = vmatpush3.bf16.msra.mxu1 %v1724_v21  ;;  %v1691_v29 = vld [vmem:[#allocation2 + $0x54] ss:$8 sps:$4 sm:$0xff]   ;;  %v1693_v30 = vld [vmem:[#allocation2 + $0x50] ss:$8 sps:$4 sm:$0xff]   ;;  %v1694_v31 = vld [vmem:[#allocation2 + $0x64] ss:$8 sps:$4 sm:$0xff]  }
  0x65   :  { %1399 = vmatprep.subr.bf16.mxu0 %v1666_v6  ;;  %1555 = vmatprep.subr.bf16.mxu1 %v1725_v22  ;;  %v1696_v32 = vld [vmem:[#allocation2 + $0x60] ss:$8 sps:$4 sm:$0xff]   ;;  %v1697_v33 = vld [vmem:[#allocation2 + $0x74] ss:$8 sps:$4 sm:$0xff]   ;;  %v1699_v34 = vld [vmem:[#allocation2 + $0x70] ss:$8 sps:$4 sm:$0xff]  }
  0x66   :  { %v1700_v35 = vld [vmem:[#allocation2 + $0x84] ss:$8 sps:$4 sm:$0xff]   ;;  %v1702_v36 = vld [vmem:[#allocation2 + $0x80] ss:$8 sps:$4 sm:$0xff]   ;;  %v1703_v37 = vld [vmem:[#allocation2 + $0x94] ss:$8 sps:$4 sm:$0xff]  }
  0x67   :  { %v1705_v38 = vld [vmem:[#allocation2 + $0x90] ss:$8 sps:$4 sm:$0xff]   ;;  %v1706_v39 = vld [vmem:[#allocation2 + $0xa4] ss:$8 sps:$4 sm:$0xff]   ;;  %v1708_v40 = vld [vmem:[#allocation2 + $0xa0] ss:$8 sps:$4 sm:$0xff]  }
  0x68   :  { %1400 = vmatpush3.bf16.msra.mxu0 %v1667_v7  ;;  %1556 = vmatpush3.bf16.msra.mxu1 %v1725_v22  ;;  %v1709_v41 = vld [vmem:[#allocation2 + $0xb4] ss:$8 sps:$4 sm:$0xff]   ;;  %v1711_v43 = vld [vmem:[#allocation2 + $0xb0] ss:$8 sps:$4 sm:$0xff]   ;;  %v1712_v44 = vld [vmem:[#allocation2 + $0xc4] ss:$8 sps:$4 sm:$0xff]  }
  0x69   :  { %1401 = vmatprep.subr.bf16.mxu0 %v1668_v8  ;;  %1557 = vmatprep.subr.bf16.mxu1 %v1726_v23  ;;  %v1727_v42 = vld [vmem:[#allocation8 + $0x18] sm:$0xff]   ;;  %v1728_v45 = vld [vmem:[#allocation8 + $0x20] sm:$0xff]   ;;  %v1729_v46 = vld [vmem:[#allocation8 + $0x28] sm:$0xff]  }
  0x6a   :  { %v1714_v47 = vld [vmem:[#allocation2 + $0xc0] ss:$8 sps:$4 sm:$0xff]   ;;  %v1715_v48 = vld [vmem:[#allocation2 + $0xd4] ss:$8 sps:$4 sm:$0xff]   ;;  %v1717_v51 = vld [vmem:[#allocation2 + $0xd0] ss:$8 sps:$4 sm:$0xff]  }
  0x6b   :  { %v1730_v49 = vld [vmem:[#allocation8 + $0x30] sm:$0xff]   ;;  %v1731_v50 = vld [vmem:[#allocation8 + $0x38] sm:$0xff]   ;;  %v1718_v52 = vld [vmem:[#allocation2 + $0xe4] ss:$8 sps:$4 sm:$0xff]  }
  0x6c   :  { %1402 = vmatpush3.bf16.msra.mxu0 %v1669_v9  ;;  %1558 = vmatpush3.bf16.msra.mxu1 %v1726_v23  ;;  %v1720_v53 = vld [vmem:[#allocation2 + $0xe0] ss:$8 sps:$4 sm:$0xff]   ;;  %v1721_v54 = vld [vmem:[#allocation2 + $0xf4] ss:$8 sps:$4 sm:$0xff]   ;;  %v1723_v55 = vld [vmem:[#allocation2 + $0xf0] ss:$8 sps:$4 sm:$0xff]  }
  0x6d   :  { %1403 = vmatprep.subr.bf16.mxu0 %v1670_v10  ;;  %1559 = vmatprep.subr.bf16.mxu1 %v1727_v42  ;;  %v2014_v58 = vld [vmem:[%s2172_s3] ss:$0 sm:$0xff] }
  0x6e   :  { %v1732_v0 = vld [vmem:[#allocation10] sm:$0xff]  }
  0x70   :  { %1404 = vmatpush3.bf16.msra.mxu0 %v1671_v12  ;;  %1560 = vmatpush3.bf16.msra.mxu1 %v1727_v42 }
  0x71   :  { %1405 = vmatprep.subr.bf16.mxu0 %v1672_v13  ;;  %1561 = vmatprep.subr.bf16.mxu1 %v1728_v45 }
  0x74   :  { %1406 = vmatpush3.bf16.msra.mxu0 %v1673_v14  ;;  %1562 = vmatpush3.bf16.msra.mxu1 %v1728_v45 }
  0x75   :  { %1407 = vmatprep.subr.bf16.mxu0 %v1674_v15  ;;  %1563 = vmatprep.subr.bf16.mxu1 %v1729_v46 }
  0x78   :  { %1408 = vmatpush3.bf16.msra.mxu0 %v1675_v16  ;;  %1564 = vmatpush3.bf16.msra.mxu1 %v1729_v46  ;;  %v1737_v46 = vld [vmem:[#allocation10 + $0x28] sm:$0xff]  }
  0x79   :  { %1565 = vmatprep.subr.bf16.mxu1 %v1730_v49 }
  0x7b   :  { %459 = vmatmul.mubr.bf16.vlgmr.msra.gmra.mrb[0].mxu0 %v1676_v17 }
  0x7c   :  { %466 = vmatprep.mubr.bf16.mxu0 %v1679_v18  ;;  %1566 = vmatpush3.bf16.msra.mxu1 %v1730_v49 }
  0x7d   :  { %1567 = vmatprep.subr.bf16.mxu1 %v1731_v50 }
  0x80   :  { %1568 = vmatpush3.bf16.msra.mxu1 %v1731_v50 }
  0x81   :  { %1601 = vmatprep.subr.bf16.mxu1 %v1732_v0 }
  0x83   :  { %467 = vmatmul.mubr.bf16.gmra.mrb[4].mxu0 %v1681_v19 }
  0x84   :  { %474 = vmatprep.mubr.bf16.mxu0 %v1682_v20  ;;  %v1733_v20 = vld [vmem:[#allocation10 + $0x8] sm:$0xff]  }
  0x8b   :  { %475 = vmatmul.mubr.bf16.gmra.mrb[8].mxu0 %v1684_v24 }
  0x8c   :  { %482 = vmatprep.mubr.bf16.mxu0 %v1685_v25  ;;  %v1734_v25 = vld [vmem:[#allocation10 + $0x10] sm:$0xff]  }
  0x93   :  { %483 = vmatmul.mubr.bf16.gmra.mrb[12].mxu0 %v1687_v26 }
  0x94   :  { %490 = vmatprep.mubr.bf16.mxu0 %v1688_v27 }
  0x9b   :  { %491 = vmatmul.mubr.bf16.gmra.mrb[16].mxu0 %v1690_v28 }
  0x9c   :  { %498 = vmatprep.mubr.bf16.mxu0 %v1691_v29 }
  0xa3   :  { %499 = vmatmul.mubr.bf16.gmra.mrb[20].mxu0 %v1693_v30 }
  0xa4   :  { %506 = vmatprep.mubr.bf16.mxu0 %v1694_v31 }
  0xab   :  { %507 = vmatmul.mubr.bf16.gmra.mrb[24].mxu0 %v1696_v32 }
  0xac   :  { %514 = vmatprep.mubr.bf16.mxu0 %v1697_v33  ;;  %v1735_v33 = vld [vmem:[#allocation10 + $0x18] sm:$0xff]  }
  0xb3   :  { %515 = vmatmul.mubr.bf16.gmra.mrb[28].mxu0 %v1699_v34 }
  0xb4   :  { %522 = vmatprep.mubr.bf16.mxu0 %v1700_v35 }
  0xbb   :  { %523 = vmatmul.mubr.bf16.gmra.mrb[32].mxu0 %v1702_v36 }
  0xbc   :  { %530 = vmatprep.mubr.bf16.mxu0 %v1703_v37 }
  0xc3   :  { %531 = vmatmul.mubr.bf16.gmra.mrb[36].mxu0 %v1705_v38  ;;  %v1736_v38 = vld [vmem:[#allocation10 + $0x20] sm:$0xff]  }
  0xc4   :  { %538 = vmatprep.mubr.bf16.mxu0 %v1706_v39 }
  0xcb   :  { %539 = vmatmul.mubr.bf16.gmra.mrb[40].mxu0 %v1708_v40 }
  0xcc   :  { %546 = vmatprep.mubr.bf16.mxu0 %v1709_v41 }
  0xd3   :  { %547 = vmatmul.mubr.bf16.gmra.mrb[44].mxu0 %v1711_v43 }
  0xd4   :  { %554 = vmatprep.mubr.bf16.mxu0 %v1712_v44 }
  0xdb   :  { %555 = vmatmul.mubr.bf16.gmra.mrb[48].mxu0 %v1714_v47 }
  0xdc   :  { %562 = vmatprep.mubr.bf16.mxu0 %v1715_v48 }
  0xe3   :  { %563 = vmatmul.mubr.bf16.gmra.mrb[52].mxu0 %v1717_v51 }
  0xe4   :  { %570 = vmatprep.mubr.bf16.mxu0 %v1718_v52 }
  0xeb   :  { %571 = vmatmul.mubr.bf16.gmra.mrb[56].mxu0 %v1720_v53 }
  0xec   :  { %578 = vmatprep.mubr.bf16.mxu0 %v1721_v54 }
  0xf3   :  { %579 = vmatmul.mubr.bf16.gmra.mrb[60].mxu0 %v1723_v55 }
 0x14e   :  { %v1409_v56 = vpop.f32.mrb[0].mxu0 }
 0x14f   :  { %v1410_v57 = vpop.f32.mrb[1].mxu0 }
 0x150   :  { %v1411_v59 = vadd.f32 %v1410_v57, %v1409_v56  ;;  %v1412_v60 = vpop.f32.mrb[2].mxu0 }
 0x151   :  { %v1413_v61 = vpop.f32.mrb[3].mxu0 }
 0x152   :  { %v1414_v62 = vadd.f32 %v1413_v61, %v1412_v60  ;;  %v461_v63 = vadd.f32 %v1411_v59, %v2014_v58 }
 0x154   :  { %v464_v1 = vadd.f32 %v1414_v62, %v2014_v58  ;;  %v587_v3 = vmax.f32 %v461_v63, 0.0 }
 0x156   :  { %v1415_v2 = vpop.f32.mrb[4].mxu0  ;;  %v588_v4 = vmax.f32 %v464_v1, 0.0 }
 0x157   :  { %v1416_v5 = vpop.f32.mrb[5].mxu0 }
 0x158   :  { %v1417_v6 = vadd.f32 %v1416_v5, %v1415_v2  ;;  %v1418_v7 = vpop.f32.mrb[6].mxu0  ;;  %v619_v8 = vpack.c.bf16 %v588_v4, %v587_v3 }
 0x159   :  { %v1419_v9 = vpop.f32.mrb[7].mxu0 }
 0x15a   :  { %v469_v10 = vadd.f32 %v1417_v6, %v2014_v58  ;;  %v1420_v11 = vadd.f32 %v1419_v9, %v1418_v7  ;;  %1569 = vmatprep.mubr.bf16.mxu1 %v619_v8 }
 0x15c   :  { %v472_v12 = vadd.f32 %v1420_v11, %v2014_v58  ;;  %v589_v13 = vmax.f32 %v469_v10, 0.0 }
 0x15e   :  { %v590_v14 = vmax.f32 %v472_v12, 0.0  ;;  %v1421_v15 = vpop.f32.mrb[8].mxu0 }
 0x15f   :  { %v1422_v16 = vpop.f32.mrb[9].mxu0 }
 0x160   :  { %v1423_v17 = vadd.f32 %v1422_v16, %v1421_v15  ;;  %v1424_v18 = vpop.f32.mrb[10].mxu0  ;;  %v620_v19 = vpack.c.bf16 %v590_v14, %v589_v13 }
 0x161   :  { %v1425_v21 = vpop.f32.mrb[11].mxu0 }
 0x162   :  { %v477_v22 = vadd.f32 %v1423_v17, %v2014_v58  ;;  %v1426_v23 = vadd.f32 %v1425_v21, %v1424_v18  ;;  %1570 = vmatmul.mubr.bf16.vlgmr.msra.gmra.mrb[0].mxu1 %v620_v19 }
 0x163   :  { %1602 = vmatpush3.bf16.msra.mxu1 %v1732_v0 }
 0x164   :  { %v480_v24 = vadd.f32 %v1426_v23, %v2014_v58  ;;  %1603 = vmatprep.subr.bf16.mxu1 %v1733_v20  ;;  %v591_v26 = vmax.f32 %v477_v22, 0.0 }
 0x166   :  { %v592_v27 = vmax.f32 %v480_v24, 0.0  ;;  %v1427_v28 = vpop.f32.mrb[12].mxu0 }
 0x167   :  { %v1428_v29 = vpop.f32.mrb[13].mxu0  ;;  %1604 = vmatpush3.bf16.msra.mxu1 %v1733_v20 }
 0x168   :  { %v1429_v30 = vadd.f32 %v1428_v29, %v1427_v28  ;;  %v1430_v31 = vpop.f32.mrb[14].mxu0  ;;  %v621_v32 = vpack.c.bf16 %v592_v27, %v591_v26  ;;  %1605 = vmatprep.subr.bf16.mxu1 %v1734_v25 }
 0x169   :  { %v1431_v34 = vpop.f32.mrb[15].mxu0 }
 0x16a   :  { %v485_v35 = vadd.f32 %v1429_v30, %v2014_v58  ;;  %v1432_v36 = vadd.f32 %v1431_v34, %v1430_v31  ;;  %1573 = vmatprep.mubr.bf16.mxu1 %v621_v32 }
 0x16b   :  { %1606 = vmatpush3.bf16.msra.mxu1 %v1734_v25 }
 0x16c   :  { %v488_v37 = vadd.f32 %v1432_v36, %v2014_v58  ;;  %1607 = vmatprep.subr.bf16.mxu1 %v1735_v33  ;;  %v593_v39 = vmax.f32 %v485_v35, 0.0 }
 0x16e   :  { %v594_v40 = vmax.f32 %v488_v37, 0.0  ;;  %v1433_v41 = vpop.f32.mrb[16].mxu0 }
 0x16f   :  { %v1434_v42 = vpop.f32.mrb[17].mxu0  ;;  %1608 = vmatpush3.bf16.msra.mxu1 %v1735_v33 }
 0x170   :  { %v1435_v43 = vadd.f32 %v1434_v42, %v1433_v41  ;;  %v1436_v44 = vpop.f32.mrb[18].mxu0  ;;  %v622_v45 = vpack.c.bf16 %v594_v40, %v593_v39  ;;  %1609 = vmatprep.subr.bf16.mxu1 %v1736_v38 }
 0x171   :  { %v1437_v47 = vpop.f32.mrb[19].mxu0 }
 0x172   :  { %v493_v48 = vadd.f32 %v1435_v43, %v2014_v58  ;;  %v1438_v49 = vadd.f32 %v1437_v47, %v1436_v44  ;;  %1574 = vmatmul.mubr.bf16.gmra.mrb[4].mxu1 %v622_v45 }
 0x173   :  { %1610 = vmatpush3.bf16.msra.mxu1 %v1736_v38 }
 0x174   :  { %v496_v50 = vadd.f32 %v1438_v49, %v2014_v58  ;;  %1611 = vmatprep.subr.bf16.mxu1 %v1737_v46  ;;  %v595_v51 = vmax.f32 %v493_v48, 0.0 }
 0x176   :  { %v596_v52 = vmax.f32 %v496_v50, 0.0  ;;  %v1439_v53 = vpop.f32.mrb[20].mxu0 }
 0x177   :  { %v1440_v54 = vpop.f32.mrb[21].mxu0  ;;  %1612 = vmatpush3.bf16.msra.mxu1 %v1737_v46 }
 0x178   :  { %v1441_v55 = vadd.f32 %v1440_v54, %v1439_v53  ;;  %v1442_v56 = vpop.f32.mrb[22].mxu0  ;;  %v623_v57 = vpack.c.bf16 %v596_v52, %v595_v51 }
 0x179   :  { %v1443_v59 = vpop.f32.mrb[23].mxu0 }
 0x17a   :  { %v501_v60 = vadd.f32 %v1441_v55, %v2014_v58  ;;  %v1444_v61 = vadd.f32 %v1443_v59, %v1442_v56  ;;  %1577 = vmatprep.mubr.bf16.mxu1 %v623_v57 }
 0x17c   :  { %v504_v62 = vadd.f32 %v1444_v61, %v2014_v58  ;;  %v597_v63 = vmax.f32 %v501_v60, 0.0 }
 0x17e   :  { %v598_v0 = vmax.f32 %v504_v62, 0.0  ;;  %v1445_v1 = vpop.f32.mrb[24].mxu0 }
 0x17f   :  { %v1446_v2 = vpop.f32.mrb[25].mxu0 }
 0x180   :  { %v1447_v3 = vadd.f32 %v1446_v2, %v1445_v1  ;;  %v1448_v4 = vpop.f32.mrb[26].mxu0  ;;  %v624_v5 = vpack.c.bf16 %v598_v0, %v597_v63 }
 0x181   :  { %v1449_v6 = vpop.f32.mrb[27].mxu0 }
 0x182   :  { %v509_v7 = vadd.f32 %v1447_v3, %v2014_v58  ;;  %v1450_v8 = vadd.f32 %v1449_v6, %v1448_v4  ;;  %1578 = vmatmul.mubr.bf16.gmra.mrb[8].mxu1 %v624_v5 }
 0x184   :  { %v512_v9 = vadd.f32 %v1450_v8, %v2014_v58  ;;  %v599_v10 = vmax.f32 %v509_v7, 0.0 }
 0x186   :  { %v600_v11 = vmax.f32 %v512_v9, 0.0  ;;  %v1451_v12 = vpop.f32.mrb[28].mxu0 }
 0x187   :  { %v1452_v13 = vpop.f32.mrb[29].mxu0 }
 0x188   :  { %v1453_v14 = vadd.f32 %v1452_v13, %v1451_v12  ;;  %v1454_v15 = vpop.f32.mrb[30].mxu0  ;;  %v625_v16 = vpack.c.bf16 %v600_v11, %v599_v10 }
 0x189   :  { %v1455_v17 = vpop.f32.mrb[31].mxu0 }
 0x18a   :  { %v517_v18 = vadd.f32 %v1453_v14, %v2014_v58  ;;  %v1456_v19 = vadd.f32 %v1455_v17, %v1454_v15  ;;  %1581 = vmatprep.mubr.bf16.mxu1 %v625_v16  ;;  %v1738_v16 = vld [vmem:[#allocation10 + $0x30] sm:$0xff]  }
 0x18b   :  { %1613 = vmatprep.subr.bf16.mxu1 %v1738_v16 }
 0x18c   :  { %v520_v20 = vadd.f32 %v1456_v19, %v2014_v58  ;;  %v601_v21 = vmax.f32 %v517_v18, 0.0  ;;  %1614 = vmatpush3.bf16.msra.mxu1 %v1738_v16 }
 0x18e   :  { %v602_v22 = vmax.f32 %v520_v20, 0.0  ;;  %v1457_v23 = vpop.f32.mrb[32].mxu0 }
 0x18f   :  { %v1458_v24 = vpop.f32.mrb[33].mxu0 }
 0x190   :  { %v1459_v25 = vadd.f32 %v1458_v24, %v1457_v23  ;;  %v1460_v26 = vpop.f32.mrb[34].mxu0  ;;  %v626_v27 = vpack.c.bf16 %v602_v22, %v601_v21  ;;  %v1739_v24 = vld [vmem:[#allocation10 + $0x38] sm:$0xff]  }
 0x191   :  { %v1461_v28 = vpop.f32.mrb[35].mxu0  ;;  %1615 = vmatprep.subr.bf16.mxu1 %v1739_v24 }
 0x192   :  { %v525_v29 = vadd.f32 %v1459_v25, %v2014_v58  ;;  %v1462_v30 = vadd.f32 %v1461_v28, %v1460_v26  ;;  %1582 = vmatmul.mubr.bf16.gmra.mrb[12].mxu1 %v626_v27 }
 0x193   :  { %1616 = vmatpush3.bf16.msra.mxu1 %v1739_v24 }
 0x194   :  { %v528_v31 = vadd.f32 %v1462_v30, %v2014_v58  ;;  %v603_v32 = vmax.f32 %v525_v29, 0.0 }
 0x196   :  { %v604_v33 = vmax.f32 %v528_v31, 0.0  ;;  %v1463_v34 = vpop.f32.mrb[36].mxu0 }
 0x197   :  { %v1464_v35 = vpop.f32.mrb[37].mxu0 }
 0x198   :  { %v1465_v36 = vadd.f32 %v1464_v35, %v1463_v34  ;;  %v1466_v37 = vpop.f32.mrb[38].mxu0  ;;  %v627_v38 = vpack.c.bf16 %v604_v33, %v603_v32 }
 0x199   :  { %v1467_v39 = vpop.f32.mrb[39].mxu0 }
 0x19a   :  { %v533_v40 = vadd.f32 %v1465_v36, %v2014_v58  ;;  %v1468_v41 = vadd.f32 %v1467_v39, %v1466_v37  ;;  %1585 = vmatprep.mubr.bf16.mxu1 %v627_v38 }
 0x19c   :  { %v536_v42 = vadd.f32 %v1468_v41, %v2014_v58  ;;  %v605_v43 = vmax.f32 %v533_v40, 0.0 }
 0x19e   :  { %v606_v44 = vmax.f32 %v536_v42, 0.0  ;;  %v1469_v45 = vpop.f32.mrb[40].mxu0 }
 0x19f   :  { %v1470_v46 = vpop.f32.mrb[41].mxu0 }
 0x1a0   :  { %v1471_v47 = vadd.f32 %v1470_v46, %v1469_v45  ;;  %v1472_v48 = vpop.f32.mrb[42].mxu0  ;;  %v628_v49 = vpack.c.bf16 %v606_v44, %v605_v43 }
 0x1a1   :  { %v1473_v50 = vpop.f32.mrb[43].mxu0 }
 0x1a2   :  { %v541_v51 = vadd.f32 %v1471_v47, %v2014_v58  ;;  %v1474_v52 = vadd.f32 %v1473_v50, %v1472_v48  ;;  %1586 = vmatmul.mubr.bf16.gmra.mrb[16].mxu1 %v628_v49 }
 0x1a4   :  { %v544_v53 = vadd.f32 %v1474_v52, %v2014_v58  ;;  %v607_v54 = vmax.f32 %v541_v51, 0.0  ;;  %v2051_v51 = vld [vmem:[%s2174_s5] ss:$0 sm:$0xff] }
 0x1a6   :  { %v608_v55 = vmax.f32 %v544_v53, 0.0  ;;  %v1475_v56 = vpop.f32.mrb[44].mxu0 }
 0x1a7   :  { %v1476_v57 = vpop.f32.mrb[45].mxu0 }
 0x1a8   :  { %v1477_v59 = vadd.f32 %v1476_v57, %v1475_v56  ;;  %v1478_v60 = vpop.f32.mrb[46].mxu0  ;;  %v629_v61 = vpack.c.bf16 %v608_v55, %v607_v54 }
 0x1a9   :  { %v1479_v62 = vpop.f32.mrb[47].mxu0 }
 0x1aa   :  { %v549_v63 = vadd.f32 %v1477_v59, %v2014_v58  ;;  %v1480_v0 = vadd.f32 %v1479_v62, %v1478_v60  ;;  %1589 = vmatprep.mubr.bf16.mxu1 %v629_v61 }
 0x1ac   :  { %v552_v1 = vadd.f32 %v1480_v0, %v2014_v58  ;;  %v609_v2 = vmax.f32 %v549_v63, 0.0 }
 0x1ae   :  { %v610_v3 = vmax.f32 %v552_v1, 0.0  ;;  %v1481_v4 = vpop.f32.mrb[48].mxu0 }
 0x1af   :  { %v1482_v5 = vpop.f32.mrb[49].mxu0 }
 0x1b0   :  { %v1483_v6 = vadd.f32 %v1482_v5, %v1481_v4  ;;  %v1484_v7 = vpop.f32.mrb[50].mxu0  ;;  %v630_v8 = vpack.c.bf16 %v610_v3, %v609_v2 }
 0x1b1   :  { %v1485_v9 = vpop.f32.mrb[51].mxu0 }
 0x1b2   :  { %v557_v10 = vadd.f32 %v1483_v6, %v2014_v58  ;;  %v1486_v11 = vadd.f32 %v1485_v9, %v1484_v7  ;;  %1590 = vmatmul.mubr.bf16.gmra.mrb[20].mxu1 %v630_v8 }
 0x1b4   :  { %v560_v12 = vadd.f32 %v1486_v11, %v2014_v58  ;;  %v611_v13 = vmax.f32 %v557_v10, 0.0 }
 0x1b6   :  { %v612_v14 = vmax.f32 %v560_v12, 0.0  ;;  %v1487_v15 = vpop.f32.mrb[52].mxu0 }
 0x1b7   :  { %v1488_v17 = vpop.f32.mrb[53].mxu0 }
 0x1b8   :  { %v1489_v18 = vadd.f32 %v1488_v17, %v1487_v15  ;;  %v1490_v19 = vpop.f32.mrb[54].mxu0  ;;  %v631_v20 = vpack.c.bf16 %v612_v14, %v611_v13 }
 0x1b9   :  { %v1491_v21 = vpop.f32.mrb[55].mxu0 }
 0x1ba   :  { %v565_v22 = vadd.f32 %v1489_v18, %v2014_v58  ;;  %v1492_v23 = vadd.f32 %v1491_v21, %v1490_v19  ;;  %1593 = vmatprep.mubr.bf16.mxu1 %v631_v20 }
 0x1bc   :  { %v568_v25 = vadd.f32 %v1492_v23, %v2014_v58  ;;  %v613_v26 = vmax.f32 %v565_v22, 0.0 }
 0x1be   :  { %v614_v27 = vmax.f32 %v568_v25, 0.0  ;;  %v1493_v28 = vpop.f32.mrb[56].mxu0 }
 0x1bf   :  { %v1494_v29 = vpop.f32.mrb[57].mxu0 }
 0x1c0   :  { %v1495_v30 = vadd.f32 %v1494_v29, %v1493_v28  ;;  %v1496_v31 = vpop.f32.mrb[58].mxu0  ;;  %v632_v32 = vpack.c.bf16 %v614_v27, %v613_v26 }
 0x1c1   :  { %v1497_v33 = vpop.f32.mrb[59].mxu0 }
 0x1c2   :  { %v573_v34 = vadd.f32 %v1495_v30, %v2014_v58  ;;  %v1498_v35 = vadd.f32 %v1497_v33, %v1496_v31  ;;  %1594 = vmatmul.mubr.bf16.gmra.mrb[24].mxu1 %v632_v32 }
 0x1c4   :  { %v576_v36 = vadd.f32 %v1498_v35, %v2014_v58  ;;  %v615_v37 = vmax.f32 %v573_v34, 0.0 }
 0x1c6   :  { %v616_v38 = vmax.f32 %v576_v36, 0.0  ;;  %v1499_v39 = vpop.f32.mrb[60].mxu0 }
 0x1c7   :  { %v1500_v40 = vpop.f32.mrb[61].mxu0 }
 0x1c8   :  { %v1501_v41 = vadd.f32 %v1500_v40, %v1499_v39  ;;  %v1502_v42 = vpop.f32.mrb[62].mxu0  ;;  %v633_v43 = vpack.c.bf16 %v616_v38, %v615_v37 }
 0x1c9   :  { %v1503_v44 = vpop.f32.mrb[63].mxu0 }
 0x1ca   :  { %v581_v45 = vadd.f32 %v1501_v41, %v2014_v58  ;;  %v1504_v46 = vadd.f32 %v1503_v44, %v1502_v42  ;;  %1597 = vmatprep.mubr.bf16.mxu1 %v633_v43 }
 0x1cc   :  { %v584_v47 = vadd.f32 %v1504_v46, %v2014_v58  ;;  %v617_v48 = vmax.f32 %v581_v45, 0.0 }
 0x1ce   :  { %v618_v49 = vmax.f32 %v584_v47, 0.0 }
 0x1d0   :  { %v634_v50 = vpack.c.bf16 %v618_v49, %v617_v48 }
 0x1d2   :  { %1598 = vmatmul.mubr.bf16.gmra.mrb[28].mxu1 %v634_v50 }
 0x235   :  { %v1571_v52 = vpop.f32.mrb[0].mxu1 }
 0x236   :  { %v749_v53 = vadd.f32 %v1571_v52, %v2051_v51  ;;  %v740_v54 = vpop.f32.mrb[1].mxu1 }
 0x237   :  { %v741_v55 = vadd.f32 %v2051_v51, %v740_v54  ;;  %v1572_v56 = vpop.f32.mrb[2].mxu1 }
 0x238   :  { %v752_v57 = vadd.f32 %v1572_v56, %v2051_v51  ;;  %v743_v59 = vpop.f32.mrb[3].mxu1  ;;  %v869_v60 = vmax.f32 %v749_v53, 0.0 }
 0x239   :  { %v744_v58 = vadd.f32 %v2051_v51, %v743_v59  ;;  %v867_v62 = vmax.f32 %v741_v55, 0.0 }
 0x23a   :  { %v870_v61 = vmax.f32 %v752_v57, 0.0 }
 0x23b   :  { %v868_v63 = vmax.f32 %v744_v58, 0.0 }
 0x23c   :  { %v900_v0 = vpack.c.bf16 %v870_v61, %v869_v60 }
 0x23d   :  { %v899_v1 = vpack.c.bf16 %v868_v63, %v867_v62 }
 0x23f   :  { %1617 = vmatprep.mubr.bf16.mxu1 %v899_v1 }
 0x240   :  { %1618 = vmatmul.mubr.bf16.vlgmr.msra.gmra.mrb[32].mxu1 %v900_v0 }
 0x245   :  { %v1575_v2 = vpop.f32.mrb[4].mxu1 }
 0x246   :  { %v765_v3 = vadd.f32 %v1575_v2, %v2051_v51  ;;  %v756_v4 = vpop.f32.mrb[5].mxu1 }
 0x247   :  { %v757_v5 = vadd.f32 %v2051_v51, %v756_v4  ;;  %v1576_v6 = vpop.f32.mrb[6].mxu1 }
 0x248   :  { %v768_v7 = vadd.f32 %v1576_v6, %v2051_v51  ;;  %v759_v8 = vpop.f32.mrb[7].mxu1  ;;  %v873_v10 = vmax.f32 %v765_v3, 0.0 }
 0x249   :  { %v760_v9 = vadd.f32 %v2051_v51, %v759_v8  ;;  %v871_v12 = vmax.f32 %v757_v5, 0.0 }
 0x24a   :  { %v874_v11 = vmax.f32 %v768_v7, 0.0 }
 0x24b   :  { %v872_v13 = vmax.f32 %v760_v9, 0.0 }
 0x24c   :  { %v902_v14 = vpack.c.bf16 %v874_v11, %v873_v10 }
 0x24d   :  { %v901_v15 = vpack.c.bf16 %v872_v13, %v871_v12 }
 0x24f   :  { %1621 = vmatprep.mubr.bf16.mxu1 %v901_v15 }
 0x250   :  { %1622 = vmatmul.mubr.bf16.gmra.mrb[36].mxu1 %v902_v14 }
 0x255   :  { %v1579_v16 = vpop.f32.mrb[8].mxu1 }
 0x256   :  { %v781_v17 = vadd.f32 %v1579_v16, %v2051_v51  ;;  %v772_v18 = vpop.f32.mrb[9].mxu1 }
 0x257   :  { %v773_v19 = vadd.f32 %v2051_v51, %v772_v18  ;;  %v1580_v20 = vpop.f32.mrb[10].mxu1 }
 0x258   :  { %v784_v21 = vadd.f32 %v1580_v20, %v2051_v51  ;;  %v775_v22 = vpop.f32.mrb[11].mxu1  ;;  %v877_v24 = vmax.f32 %v781_v17, 0.0 }
 0x259   :  { %v776_v23 = vadd.f32 %v2051_v51, %v775_v22  ;;  %v875_v26 = vmax.f32 %v773_v19, 0.0 }
 0x25a   :  { %v878_v25 = vmax.f32 %v784_v21, 0.0 }
 0x25b   :  { %v876_v27 = vmax.f32 %v776_v23, 0.0 }
 0x25c   :  { %v904_v28 = vpack.c.bf16 %v878_v25, %v877_v24 }
 0x25d   :  { %v903_v29 = vpack.c.bf16 %v876_v27, %v875_v26 }
 0x25f   :  { %1625 = vmatprep.mubr.bf16.mxu1 %v903_v29 }
 0x260   :  { %1626 = vmatmul.mubr.bf16.gmra.mrb[40].mxu1 %v904_v28 }
 0x265   :  { %v1583_v30 = vpop.f32.mrb[12].mxu1 }
 0x266   :  { %v797_v31 = vadd.f32 %v1583_v30, %v2051_v51  ;;  %v788_v32 = vpop.f32.mrb[13].mxu1 }
 0x267   :  { %v789_v33 = vadd.f32 %v2051_v51, %v788_v32  ;;  %v1584_v34 = vpop.f32.mrb[14].mxu1 }
 0x268   :  { %v800_v35 = vadd.f32 %v1584_v34, %v2051_v51  ;;  %v791_v36 = vpop.f32.mrb[15].mxu1  ;;  %v881_v38 = vmax.f32 %v797_v31, 0.0 }
 0x269   :  { %v792_v37 = vadd.f32 %v2051_v51, %v791_v36  ;;  %v879_v40 = vmax.f32 %v789_v33, 0.0 }
 0x26a   :  { %v882_v39 = vmax.f32 %v800_v35, 0.0 }
 0x26b   :  { %v880_v41 = vmax.f32 %v792_v37, 0.0  ;;  %v1149_v37 = vld [vmem:[#allocation5 + $0x10] sm:$0xff] }
 0x26c   :  { %v906_v42 = vpack.c.bf16 %v882_v39, %v881_v38  ;;  %v1147_v38 = vld [vmem:[#allocation5] sm:$0xff]  ;;  %v1150_v39 = vld [vmem:[#allocation5 + $0x18] sm:$0xff]  ;;  %vm1181_vm0 = vcmp.eq.f32.partialorder %v1149_v37, 0.0 }
 0x26d   :  { %v905_v43 = vpack.c.bf16 %v880_v41, %v879_v40  ;;  %v1148_v40 = vld [vmem:[#allocation5 + $0x8] sm:$0xff]  ;;  %v2088_v41 = vld [vmem:[%s2176_s7] ss:$0 sm:$0xff]  ;;  %vm1179_vm1 = vcmp.eq.f32.partialorder %v1147_v38, 0.0  ;;  %vm1182_vm2 = vcmp.eq.f32.partialorder %v1150_v39, 0.0  ;;  %v1162_v37 = vld [vmem:[#allocation5 + $0x78] sm:$0xff] }
 0x26e   :  { %vm1180_vm3 = vcmp.eq.f32.partialorder %v1148_v40, 0.0  ;;  %v1160_v38 = vld [vmem:[#allocation5 + $0x68] sm:$0xff]  ;;  %vm1194_vm14 = vcmp.eq.f32.partialorder %v1162_v37, 0.0  ;;  %s1890_s7 = smov [#allocation11]  }
 0x26f   :  { %1629 = vmatprep.mubr.bf16.mxu1 %v905_v43  ;;  %vm1192_vm15 = vcmp.eq.f32.partialorder %v1160_v38, 0.0  ;;  %s1312_s27 = sshll.u32 %s1890_s7, 4  ;;  %s1313_s27 = int_to_ptr.vmem [resolvable:$true] %s1312_s27 }
 0x270   :  { %1630 = vmatmul.mubr.bf16.gmra.mrb[44].mxu1 %v906_v42  ;;  %v1889_v42 = vmov 0.0   ;;  %s1850_s29 = scalar_lea.vmem %s1313_s27, 4096  ;;  %p1855_p13 = scmp.lt.s32.totalorder %s1313_s27, %s1313_s27 }
 0x271   :  { %v1213_v43 = vsel %vm1181_vm0, -1e+09, %v1889_v42  ;;  %p1851_p12 = scmp.ne.s32.totalorder %s1313_s27, %s1850_s29  ;;  %p1856_p0 = scmp.lt.s32.totalorder %s1850_s29, %s1850_s29 }
 0x273   :  { %p1857_p1 = por %p1856_p0, %p1855_p13 }
 0x275   :  { %v1587_v44 = vpop.f32.mrb[16].mxu1  ;;  %p1858_p2 = pnand %p1857_p1, %p1851_p12 }
 0x276   :  { %v813_v45 = vadd.f32 %v1587_v44, %v2051_v51  ;;  %v804_v46 = vpop.f32.mrb[17].mxu1 }
 0x277   :  { %v805_v47 = vadd.f32 %v2051_v51, %v804_v46  ;;  %v1588_v48 = vpop.f32.mrb[18].mxu1  ;;  %v1211_v46 = vsel %vm1179_vm1, -1e+09, %v1889_v42 }
 0x278   :  { %v816_v49 = vadd.f32 %v1588_v48, %v2051_v51  ;;  %v807_v50 = vpop.f32.mrb[19].mxu1  ;;  %v885_v53 = vmax.f32 %v813_v45, 0.0 }
 0x279   :  { %v808_v52 = vadd.f32 %v2051_v51, %v807_v50  ;;  %v883_v55 = vmax.f32 %v805_v47, 0.0 }
 0x27a   :  { %v886_v54 = vmax.f32 %v816_v49, 0.0  ;;  %v1214_v49 = vsel %vm1182_vm2, -1e+09, %v1889_v42 }
 0x27b   :  { %v884_v56 = vmax.f32 %v808_v52, 0.0 }
 0x27c   :  { %v908_v57 = vpack.c.bf16 %v886_v54, %v885_v53  ;;  %v1212_v54 = vsel %vm1180_vm3, -1e+09, %v1889_v42 }
 0x27d   :  { %v907_v59 = vpack.c.bf16 %v884_v56, %v883_v55 }
 0x27f   :  { %1633 = vmatprep.mubr.bf16.mxu1 %v907_v59 }
 0x280   :  { %1634 = vmatmul.mubr.bf16.gmra.mrb[48].mxu1 %v908_v57 }
 0x285   :  { %v1591_v58 = vpop.f32.mrb[20].mxu1 }
 0x286   :  { %v829_v60 = vadd.f32 %v1591_v58, %v2051_v51  ;;  %v820_v61 = vpop.f32.mrb[21].mxu1  ;;  %v1153_v58 = vld [vmem:[#allocation5 + $0x30] sm:$0xff] }
 0x287   :  { %v821_v62 = vadd.f32 %v2051_v51, %v820_v61  ;;  %v1592_v63 = vpop.f32.mrb[22].mxu1  ;;  %v1154_v61 = vld [vmem:[#allocation5 + $0x38] sm:$0xff]  ;;  %vm1185_vm4 = vcmp.eq.f32.partialorder %v1153_v58, 0.0 }
 0x288   :  { %v832_v0 = vadd.f32 %v1592_v63, %v2051_v51  ;;  %v823_v1 = vpop.f32.mrb[23].mxu1  ;;  %v889_v3 = vmax.f32 %v829_v60, 0.0  ;;  %v1151_v60 = vld [vmem:[#allocation5 + $0x20] sm:$0xff]  ;;  %vm1186_vm6 = vcmp.eq.f32.partialorder %v1154_v61, 0.0  ;;  %v1166_v58 = vld [vmem:[#allocation5 + $0x98] sm:$0xff] }
 0x289   :  { %v824_v2 = vadd.f32 %v2051_v51, %v823_v1  ;;  %v887_v5 = vmax.f32 %v821_v62, 0.0  ;;  %v1152_v62 = vld [vmem:[#allocation5 + $0x28] sm:$0xff]  ;;  %vm1183_vm5 = vcmp.eq.f32.partialorder %v1151_v60, 0.0  ;;  %vm1198_vm2 = vcmp.eq.f32.partialorder %v1166_v58, 0.0 }
 0x28a   :  { %v890_v4 = vmax.f32 %v832_v0, 0.0  ;;  %v1217_v0 = vsel %vm1185_vm4, -1e+09, %v1889_v42  ;;  %vm1184_vm7 = vcmp.eq.f32.partialorder %v1152_v62, 0.0  ;;  %v1164_v60 = vld [vmem:[#allocation5 + $0x88] sm:$0xff] }
 0x28b   :  { %v888_v6 = vmax.f32 %v824_v2, 0.0  ;;  %vm1196_vm3 = vcmp.eq.f32.partialorder %v1164_v60, 0.0 }
 0x28c   :  { %v910_v7 = vpack.c.bf16 %v890_v4, %v889_v3  ;;  %v1215_v3 = vsel %vm1183_vm5, -1e+09, %v1889_v42 }
 0x28d   :  { %v909_v8 = vpack.c.bf16 %v888_v6, %v887_v5  ;;  %v1218_v6 = vsel %vm1186_vm6, -1e+09, %v1889_v42 }
 0x28f   :  { %1637 = vmatprep.mubr.bf16.mxu1 %v909_v8 }
 0x290   :  { %1638 = vmatmul.mubr.bf16.gmra.mrb[52].mxu1 %v910_v7 }
 0x295   :  { %v1595_v9 = vpop.f32.mrb[24].mxu1 }
 0x296   :  { %v845_v10 = vadd.f32 %v1595_v9, %v2051_v51  ;;  %v836_v11 = vpop.f32.mrb[25].mxu1 }
 0x297   :  { %v837_v12 = vadd.f32 %v2051_v51, %v836_v11  ;;  %v1596_v13 = vpop.f32.mrb[26].mxu1 }
 0x298   :  { %v848_v14 = vadd.f32 %v1596_v13, %v2051_v51  ;;  %v839_v15 = vpop.f32.mrb[27].mxu1  ;;  %v893_v17 = vmax.f32 %v845_v10, 0.0  ;;  %v1216_v10 = vsel %vm1184_vm7, -1e+09, %v1889_v42 }
 0x299   :  { %v840_v16 = vadd.f32 %v2051_v51, %v839_v15  ;;  %v891_v19 = vmax.f32 %v837_v12, 0.0  ;;  %v1157_v15 = vld [vmem:[#allocation5 + $0x50] sm:$0xff] }
 0x29a   :  { %v894_v18 = vmax.f32 %v848_v14, 0.0  ;;  %vm1189_vm8 = vcmp.eq.f32.partialorder %v1157_v15, 0.0  ;;  %v1170_v15 = vld [vmem:[#allocation5 + $0xb8] sm:$0xff] }
 0x29b   :  { %v892_v20 = vmax.f32 %v840_v16, 0.0  ;;  %v1155_v16 = vld [vmem:[#allocation5 + $0x40] sm:$0xff]  ;;  %vm1202_vm6 = vcmp.eq.f32.partialorder %v1170_v15, 0.0 }
 0x29c   :  { %v912_v21 = vpack.c.bf16 %v894_v18, %v893_v17  ;;  %v1158_v17 = vld [vmem:[#allocation5 + $0x58] sm:$0xff]  ;;  %v1156_v18 = vld [vmem:[#allocation5 + $0x48] sm:$0xff]  ;;  %vm1187_vm9 = vcmp.eq.f32.partialorder %v1155_v16, 0.0 }
 0x29d   :  { %v911_v22 = vpack.c.bf16 %v892_v20, %v891_v19  ;;  %vm1190_vm10 = vcmp.eq.f32.partialorder %v1158_v17, 0.0  ;;  %v1221_v20 = vsel %vm1189_vm8, -1e+09, %v1889_v42  ;;  %vm1188_vm11 = vcmp.eq.f32.partialorder %v1156_v18, 0.0  ;;  %v1168_v16 = vld [vmem:[#allocation5 + $0xa8] sm:$0xff] }
 0x29e   :  { %vm1200_vm7 = vcmp.eq.f32.partialorder %v1168_v16, 0.0 }
 0x29f   :  { %1641 = vmatprep.mubr.bf16.mxu1 %v911_v22 }
 0x2a0   :  { %1642 = vmatmul.mubr.bf16.gmra.mrb[56].mxu1 %v912_v21 }
 0x2a5   :  { %v1599_v23 = vpop.f32.mrb[28].mxu1 }
 0x2a6   :  { %v861_v24 = vadd.f32 %v1599_v23, %v2051_v51  ;;  %v852_v25 = vpop.f32.mrb[29].mxu1  ;;  %v1219_v23 = vsel %vm1187_vm9, -1e+09, %v1889_v42 }
 0x2a7   :  { %v853_v26 = vadd.f32 %v2051_v51, %v852_v25  ;;  %v1600_v27 = vpop.f32.mrb[30].mxu1 }
 0x2a8   :  { %v864_v28 = vadd.f32 %v1600_v27, %v2051_v51  ;;  %v855_v29 = vpop.f32.mrb[31].mxu1  ;;  %v897_v31 = vmax.f32 %v861_v24, 0.0 }
 0x2a9   :  { %v856_v30 = vadd.f32 %v2051_v51, %v855_v29  ;;  %v895_v33 = vmax.f32 %v853_v26, 0.0  ;;  %v1222_v26 = vsel %vm1190_vm10, -1e+09, %v1889_v42 }
 0x2aa   :  { %v898_v32 = vmax.f32 %v864_v28, 0.0 }
 0x2ab   :  { %v896_v34 = vmax.f32 %v856_v30, 0.0  ;;  %v1220_v30 = vsel %vm1188_vm11, -1e+09, %v1889_v42 }
 0x2ac   :  { %v914_v35 = vpack.c.bf16 %v898_v32, %v897_v31 }
 0x2ad   :  { %v913_v36 = vpack.c.bf16 %v896_v34, %v895_v33 }
 0x2af   :  { %1645 = vmatprep.mubr.bf16.mxu1 %v913_v36  ;;  %v1159_v36 = vld [vmem:[#allocation5 + $0x60] sm:$0xff] }
 0x2b0   :  { %1646 = vmatmul.mubr.bf16.gmra.mrb[60].mxu1 %v914_v35  ;;  %v1161_v35 = vld [vmem:[#allocation5 + $0x70] sm:$0xff]  ;;  %vm1191_vm13 = vcmp.eq.f32.partialorder %v1159_v36, 0.0  ;;  %v1172_v36 = vld [vmem:[#allocation5 + $0xc8] sm:$0xff] }
 0x2b1   :  { %vm1193_vm12 = vcmp.eq.f32.partialorder %v1161_v35, 0.0  ;;  %v1174_v35 = vld [vmem:[#allocation5 + $0xd8] sm:$0xff]  ;;  %vm1204_vm11 = vcmp.eq.f32.partialorder %v1172_v36, 0.0 }
 0x2b2   :  { %v1225_v40 = vsel %vm1193_vm12, -1e+09, %v1889_v42  ;;  %vm1206_vm10 = vcmp.eq.f32.partialorder %v1174_v35, 0.0 }
 0x313   :  { %v1619_v51 = vpop.f32.mrb[32].mxu1 }
 0x314   :  { %v1029_v44 = vadd.f32 %v1619_v51, %v2088_v41  ;;  %v1020_v45 = vpop.f32.mrb[33].mxu1 }
 0x315   :  { %v1021_v47 = vadd.f32 %v2088_v41, %v1020_v45  ;;  %v1620_v48 = vpop.f32.mrb[34].mxu1 }
 0x316   :  { %v1245_v50 = vadd.f32 %v1213_v43, %v1029_v44  ;;  %v1032_v52 = vadd.f32 %v1620_v48, %v2088_v41  ;;  %v1023_v53 = vpop.f32.mrb[35].mxu1  ;;  %v1223_v44 = vsel %vm1191_vm13, -1e+09, %v1889_v42 }
 0x317   :  { %v1243_v55 = vadd.f32 %v1211_v46, %v1021_v47  ;;  %v1024_v56 = vadd.f32 %v2088_v41, %v1023_v53  ;;  %v1226_v47 = vsel %vm1194_vm14, -1e+09, %v1889_v42 }
 0x318   :  { %1277 = vst [vmem:[#allocation11 + $0x10] sm:$0xff] %v1245_v50  ;;  %v1246_v57 = vadd.f32 %v1214_v49, %v1032_v52  ;;  %v1224_v52 = vsel %vm1192_vm15, -1e+09, %v1889_v42 }
 0x319   :  { %1275 = vst [vmem:[#allocation11] sm:$0xff] %v1243_v55  ;;  %v1244_v59 = vadd.f32 %v1212_v54, %v1024_v56 }
 0x31a   :  { %1278 = vst [vmem:[#allocation11 + $0x18] sm:$0xff] %v1246_v57  ;;  %v1165_v57 = vld [vmem:[#allocation5 + $0x90] sm:$0xff] }
 0x31b   :  { %1276 = vst [vmem:[#allocation11 + $0x8] sm:$0xff] %v1244_v59  ;;  %v1163_v59 = vld [vmem:[#allocation5 + $0x80] sm:$0xff]  ;;  %vm1197_vm0 = vcmp.eq.f32.partialorder %v1165_v57, 0.0  ;;  %v1178_v57 = vld [vmem:[#allocation5 + $0xf8] sm:$0xff] }
 0x31c   :  { %vm1195_vm1 = vcmp.eq.f32.partialorder %v1163_v59, 0.0  ;;  %v1229_v62 = vsel %vm1197_vm0, -1e+09, %v1889_v42  ;;  %v1176_v59 = vld [vmem:[#allocation5 + $0xe8] sm:$0xff]  ;;  %vm1210_vm14 = vcmp.eq.f32.partialorder %v1178_v57, 0.0 }
 0x31d   :  { %vm1208_vm15 = vcmp.eq.f32.partialorder %v1176_v59, 0.0 }
 0x323   :  { %v1623_v63 = vpop.f32.mrb[36].mxu1 }
 0x324   :  { %v1045_v1 = vadd.f32 %v1623_v63, %v2088_v41  ;;  %v1036_v2 = vpop.f32.mrb[37].mxu1 }
 0x325   :  { %v1037_v4 = vadd.f32 %v2088_v41, %v1036_v2  ;;  %v1624_v5 = vpop.f32.mrb[38].mxu1 }
 0x326   :  { %v1249_v7 = vadd.f32 %v1217_v0, %v1045_v1  ;;  %v1048_v8 = vadd.f32 %v1624_v5, %v2088_v41  ;;  %v1039_v9 = vpop.f32.mrb[39].mxu1  ;;  %v1227_v1 = vsel %vm1195_vm1, -1e+09, %v1889_v42 }
 0x327   :  { %v1247_v11 = vadd.f32 %v1215_v3, %v1037_v4  ;;  %v1040_v12 = vadd.f32 %v2088_v41, %v1039_v9  ;;  %v1230_v4 = vsel %vm1198_vm2, -1e+09, %v1889_v42 }
 0x328   :  { %1281 = vst [vmem:[#allocation11 + $0x30] sm:$0xff] %v1249_v7  ;;  %v1250_v13 = vadd.f32 %v1218_v6, %v1048_v8  ;;  %v1228_v8 = vsel %vm1196_vm3, -1e+09, %v1889_v42 }
 0x329   :  { %1279 = vst [vmem:[#allocation11 + $0x20] sm:$0xff] %v1247_v11  ;;  %v1248_v14 = vadd.f32 %v1216_v10, %v1040_v12 }
 0x32a   :  { %1282 = vst [vmem:[#allocation11 + $0x38] sm:$0xff] %v1250_v13  ;;  %v1169_v13 = vld [vmem:[#allocation5 + $0xb0] sm:$0xff] }
 0x32b   :  { %1280 = vst [vmem:[#allocation11 + $0x28] sm:$0xff] %v1248_v14  ;;  %v1167_v14 = vld [vmem:[#allocation5 + $0xa0] sm:$0xff]  ;;  %vm1201_vm4 = vcmp.eq.f32.partialorder %v1169_v13, 0.0 }
 0x32c   :  { %vm1199_vm5 = vcmp.eq.f32.partialorder %v1167_v14, 0.0  ;;  %v1233_v18 = vsel %vm1201_vm4, -1e+09, %v1889_v42 }
 0x333   :  { %v1627_v19 = vpop.f32.mrb[40].mxu1 }
 0x334   :  { %v1061_v21 = vadd.f32 %v1627_v19, %v2088_v41  ;;  %v1052_v22 = vpop.f32.mrb[41].mxu1 }
 0x335   :  { %v1053_v24 = vadd.f32 %v2088_v41, %v1052_v22  ;;  %v1628_v25 = vpop.f32.mrb[42].mxu1 }
 0x336   :  { %v1253_v27 = vadd.f32 %v1221_v20, %v1061_v21  ;;  %v1064_v28 = vadd.f32 %v1628_v25, %v2088_v41  ;;  %v1055_v29 = vpop.f32.mrb[43].mxu1  ;;  %v1231_v21 = vsel %vm1199_vm5, -1e+09, %v1889_v42 }
 0x337   :  { %v1251_v31 = vadd.f32 %v1219_v23, %v1053_v24  ;;  %v1056_v32 = vadd.f32 %v2088_v41, %v1055_v29  ;;  %v1234_v24 = vsel %vm1202_vm6, -1e+09, %v1889_v42 }
 0x338   :  { %1285 = vst [vmem:[#allocation11 + $0x50] sm:$0xff] %v1253_v27  ;;  %v1254_v33 = vadd.f32 %v1222_v26, %v1064_v28  ;;  %v1232_v28 = vsel %vm1200_vm7, -1e+09, %v1889_v42 }
 0x339   :  { %1283 = vst [vmem:[#allocation11 + $0x40] sm:$0xff] %v1251_v31  ;;  %v1252_v34 = vadd.f32 %v1220_v30, %v1056_v32 }
 0x33a   :  { %1286 = vst [vmem:[#allocation11 + $0x58] sm:$0xff] %v1254_v33  ;;  %v1173_v33 = vld [vmem:[#allocation5 + $0xd0] sm:$0xff] }
 0x33b   :  { %1284 = vst [vmem:[#allocation11 + $0x48] sm:$0xff] %v1252_v34  ;;  %v1171_v34 = vld [vmem:[#allocation5 + $0xc0] sm:$0xff]  ;;  %vm1205_vm8 = vcmp.eq.f32.partialorder %v1173_v33, 0.0 }
 0x33c   :  { %vm1203_vm9 = vcmp.eq.f32.partialorder %v1171_v34, 0.0  ;;  %v1237_v38 = vsel %vm1205_vm8, -1e+09, %v1889_v42 }
 0x343   :  { %v1631_v39 = vpop.f32.mrb[44].mxu1 }
 0x344   :  { %v1077_v51 = vadd.f32 %v1631_v39, %v2088_v41  ;;  %v1068_v43 = vpop.f32.mrb[45].mxu1 }
 0x345   :  { %v1069_v45 = vadd.f32 %v2088_v41, %v1068_v43  ;;  %v1632_v46 = vpop.f32.mrb[46].mxu1 }
 0x346   :  { %v1257_v48 = vadd.f32 %v1225_v40, %v1077_v51  ;;  %v1080_v49 = vadd.f32 %v1632_v46, %v2088_v41  ;;  %v1071_v50 = vpop.f32.mrb[47].mxu1  ;;  %v1235_v51 = vsel %vm1203_vm9, -1e+09, %v1889_v42 }
 0x347   :  { %v1255_v53 = vadd.f32 %v1223_v44, %v1069_v45  ;;  %v1072_v54 = vadd.f32 %v2088_v41, %v1071_v50  ;;  %v1238_v45 = vsel %vm1206_vm10, -1e+09, %v1889_v42 }
 0x348   :  { %1289 = vst [vmem:[#allocation11 + $0x70] sm:$0xff] %v1257_v48  ;;  %v1258_v55 = vadd.f32 %v1226_v47, %v1080_v49  ;;  %v1236_v49 = vsel %vm1204_vm11, -1e+09, %v1889_v42 }
 0x349   :  { %1287 = vst [vmem:[#allocation11 + $0x60] sm:$0xff] %v1255_v53  ;;  %v1256_v56 = vadd.f32 %v1224_v52, %v1072_v54 }
 0x34a   :  { %1290 = vst [vmem:[#allocation11 + $0x78] sm:$0xff] %v1258_v55  ;;  %v1177_v55 = vld [vmem:[#allocation5 + $0xf0] sm:$0xff] }
 0x34b   :  { %1288 = vst [vmem:[#allocation11 + $0x68] sm:$0xff] %v1256_v56  ;;  %v1175_v56 = vld [vmem:[#allocation5 + $0xe0] sm:$0xff]  ;;  %vm1209_vm12 = vcmp.eq.f32.partialorder %v1177_v55, 0.0 }
 0x34c   :  { %vm1207_vm13 = vcmp.eq.f32.partialorder %v1175_v56, 0.0  ;;  %v1241_v60 = vsel %vm1209_vm12, -1e+09, %v1889_v42 }
 0x353   :  { %v1635_v61 = vpop.f32.mrb[48].mxu1 }
 0x354   :  { %v1093_v63 = vadd.f32 %v1635_v61, %v2088_v41  ;;  %v1084_v0 = vpop.f32.mrb[49].mxu1 }
 0x355   :  { %v1085_v2 = vadd.f32 %v2088_v41, %v1084_v0  ;;  %v1636_v3 = vpop.f32.mrb[50].mxu1 }
 0x356   :  { %v1261_v5 = vadd.f32 %v1229_v62, %v1093_v63  ;;  %v1096_v6 = vadd.f32 %v1636_v3, %v2088_v41  ;;  %v1087_v7 = vpop.f32.mrb[51].mxu1  ;;  %v1239_v63 = vsel %vm1207_vm13, -1e+09, %v1889_v42 }
 0x357   :  { %v1259_v9 = vadd.f32 %v1227_v1, %v1085_v2  ;;  %v1088_v10 = vadd.f32 %v2088_v41, %v1087_v7  ;;  %v1242_v2 = vsel %vm1210_vm14, -1e+09, %v1889_v42 }
 0x358   :  { %1293 = vst [vmem:[#allocation11 + $0x90] sm:$0xff] %v1261_v5  ;;  %v1262_v11 = vadd.f32 %v1230_v4, %v1096_v6  ;;  %v1240_v6 = vsel %vm1208_vm15, -1e+09, %v1889_v42 }
 0x359   :  { %1291 = vst [vmem:[#allocation11 + $0x80] sm:$0xff] %v1259_v9  ;;  %v1260_v12 = vadd.f32 %v1228_v8, %v1088_v10 }
 0x35a   :  { %1294 = vst [vmem:[#allocation11 + $0x98] sm:$0xff] %v1262_v11 }
 0x35b   :  { %1292 = vst [vmem:[#allocation11 + $0x88] sm:$0xff] %v1260_v12 }
 0x363   :  { %v1639_v17 = vpop.f32.mrb[52].mxu1 }
 0x364   :  { %v1109_v19 = vadd.f32 %v1639_v17, %v2088_v41  ;;  %v1100_v20 = vpop.f32.mrb[53].mxu1 }
 0x365   :  { %v1101_v22 = vadd.f32 %v2088_v41, %v1100_v20  ;;  %v1640_v23 = vpop.f32.mrb[54].mxu1 }
 0x366   :  { %v1265_v25 = vadd.f32 %v1233_v18, %v1109_v19  ;;  %v1112_v26 = vadd.f32 %v1640_v23, %v2088_v41  ;;  %v1103_v27 = vpop.f32.mrb[55].mxu1 }
 0x367   :  { %v1263_v29 = vadd.f32 %v1231_v21, %v1101_v22  ;;  %v1104_v30 = vadd.f32 %v2088_v41, %v1103_v27 }
 0x368   :  { %1297 = vst [vmem:[#allocation11 + $0xb0] sm:$0xff] %v1265_v25  ;;  %v1266_v31 = vadd.f32 %v1234_v24, %v1112_v26 }
 0x369   :  { %1295 = vst [vmem:[#allocation11 + $0xa0] sm:$0xff] %v1263_v29  ;;  %v1264_v32 = vadd.f32 %v1232_v28, %v1104_v30 }
 0x36a   :  { %1298 = vst [vmem:[#allocation11 + $0xb8] sm:$0xff] %v1266_v31 }
 0x36b   :  { %1296 = vst [vmem:[#allocation11 + $0xa8] sm:$0xff] %v1264_v32 }
 0x373   :  { %v1643_v37 = vpop.f32.mrb[56].mxu1 }
 0x374   :  { %v1125_v39 = vadd.f32 %v1643_v37, %v2088_v41  ;;  %v1116_v40 = vpop.f32.mrb[57].mxu1 }
 0x375   :  { %v1117_v43 = vadd.f32 %v2088_v41, %v1116_v40  ;;  %v1644_v44 = vpop.f32.mrb[58].mxu1 }
 0x376   :  { %v1269_v46 = vadd.f32 %v1237_v38, %v1125_v39  ;;  %v1128_v47 = vadd.f32 %v1644_v44, %v2088_v41  ;;  %v1119_v48 = vpop.f32.mrb[59].mxu1 }
 0x377   :  { %v1267_v50 = vadd.f32 %v1235_v51, %v1117_v43  ;;  %v1120_v52 = vadd.f32 %v2088_v41, %v1119_v48 }
 0x378   :  { %1301 = vst [vmem:[#allocation11 + $0xd0] sm:$0xff] %v1269_v46  ;;  %v1270_v53 = vadd.f32 %v1238_v45, %v1128_v47 }
 0x379   :  { %1299 = vst [vmem:[#allocation11 + $0xc0] sm:$0xff] %v1267_v50  ;;  %v1268_v54 = vadd.f32 %v1236_v49, %v1120_v52 }
 0x37a   :  { %1302 = vst [vmem:[#allocation11 + $0xd8] sm:$0xff] %v1270_v53 }
 0x37b   :  { %1300 = vst [vmem:[#allocation11 + $0xc8] sm:$0xff] %v1268_v54 }
 0x383   :  { %v1647_v58 = vpop.f32.mrb[60].mxu1 }
 0x384   :  { %v1141_v61 = vadd.f32 %v1647_v58, %v2088_v41  ;;  %v1132_v62 = vpop.f32.mrb[61].mxu1 }
 0x385   :  { %v1133_v0 = vadd.f32 %v2088_v41, %v1132_v62  ;;  %v1648_v1 = vpop.f32.mrb[62].mxu1 }
 0x386   :  { %v1273_v3 = vadd.f32 %v1241_v60, %v1141_v61  ;;  %v1144_v4 = vadd.f32 %v1648_v1, %v2088_v41  ;;  %v1135_v5 = vpop.f32.mrb[63].mxu1 }
 0x387   :  { %v1271_v7 = vadd.f32 %v1239_v63, %v1133_v0  ;;  %v1136_v8 = vadd.f32 %v2088_v41, %v1135_v5 }
 0x388   :  { %1305 = vst [vmem:[#allocation11 + $0xf0] sm:$0xff] %v1273_v3  ;;  %v1274_v9 = vadd.f32 %v1242_v2, %v1144_v4 }
 0x389   :  { %1303 = vst [vmem:[#allocation11 + $0xe0] sm:$0xff] %v1271_v7  ;;  %v1272_v10 = vadd.f32 %v1240_v6, %v1136_v8 }
 0x38a   :  { %1306 = vst [vmem:[#allocation11 + $0xf8] sm:$0xff] %v1274_v9 }
 0x38b   :  { %1304 = vst [vmem:[#allocation11 + $0xe8] sm:$0xff] %v1272_v10 }
 0x38c   :  { %1861 = shalt.err (!%p1858_p2)
}
 0x38d   :  { %s1862_s10 = scalar_lea.hbm %s2177_s8, 4096 }
 0x38e   :  { %p1863_p3 = scmp.ne.s32.totalorder %s2177_s8, %s1862_s10  ;;  %p1866_p4 = scmp.lt.u32.totalorder %s1862_s10, %s2177_s8 }
 0x390   :  { %p1868_p5 = pnand %p1866_p4, %p1863_p3 }
 0x392   :  { %1871 = shalt.err (!%p1868_p5)
}
 0x393   :  { %1318 = dma.vmem_to_hbm [thread:$0]  %s1313_s27, 4096, %s2177_s8, [#allocation4], %s1881_s15, %s1881_s15, %s1882_s16  }
 0x394   :  { %1878 = dma.done.wait [#allocation4], 4096  }
 0x395   :  { %1879 = vsyncadd [#allocation4], 4294963200 }
 0x396   :  { %1322 = vsyncpa [#allocation3], 1 }
 0x397   :  { %1323 = vsyncpa [#allocation6], 1 }
 0x398   :  { %1324 = vsyncpa [#allocation9], 1 }
 0x399   :  { %1325 = vsyncpa [#allocation4], 1 }

</bundles_post_ra>
